<compile_context>
chip_gen: v7x
topology: tpu7x:2x2x1
jax: 0.10.0
libtpu: 0.0.40
codegen_flags: <defaults>
</compile_context>

<pallas_src>
import functools

import jax
import jax.numpy as jnp
import numpy as np
from jax.experimental import pallas as pl
from jax.experimental.pallas import tpu as pltpu

VOCAB_STREAMS = ("onset", "duration", "pitch", "velocity")   # one-hot token streams
UNCOND = "unconditional"                                     # width-1 dense stream
_NC = 8                                                      # cols of merged int32 operand


def _round_up(x, m):
    return ((x + m - 1) // m) * m


def _cdiv(a, b):
    return -(-a // b)


# ------------------------------ Pallas kernel ------------------------------ #
def _midi_embed_kernel(tok_ref, wp_ref, o_ref, *, eps, n_streams, vpad):
    """Fused token gather (multi-hot @ W on the MXU) + bias + uncond + LayerNorm.

    tok_ref: (tm, 8)       int32  cols 0..NS-1: global vocab-column per stream
                                  (masked/padded rows point at a zero weight row),
                                  col NS: float32 bits of the 'unconditional' value.
    wp_ref:  (vpad+8, E)   f32    rows 0..vpad-1: stacked per-stream weights
                                  (zero-padded); row vpad: summed biases;
                                  vpad+1: LN gamma; vpad+2: LN beta;
                                  vpad+3: unconditional weight row; rest zero.
    o_ref:   (tm, E)       f32    output embeddings.
    """
    tm = o_ref.shape[0]
    lane = jax.lax.broadcasted_iota(jnp.int32, (tm, vpad), 1)

    # Rebuild the concatenated multi-hot row (disjoint vocab ranges -> OR of one-hots).
    if n_streams > 0:
        hot = lane == tok_ref[:, 0:1]
        for k in range(1, n_streams):
            hot = hot | (lane == tok_ref[:, k:k + 1])
        x = hot.astype(jnp.float32)
    else:
        x = jnp.zeros((tm, vpad), jnp.float32)

    # One small MXU matmul == sum of the per-stream linears; W stays VMEM-resident.
    y = jnp.dot(x, wp_ref[0:vpad, :], preferred_element_type=jnp.float32)

    b_sum = wp_ref[vpad + 0:vpad + 1, :]   # (1, E) summed linear biases
    gamma = wp_ref[vpad + 1:vpad + 2, :]   # (1, E) LayerNorm weight
    beta = wp_ref[vpad + 2:vpad + 3, :]    # (1, E) LayerNorm bias
    w_unc = wp_ref[vpad + 3:vpad + 4, :]   # (1, E) 'unconditional' Linear weight row

    # Width-1 'unconditional' stream as a rank-1 post-matmul update (no 128-lane where).
    uval = pltpu.bitcast(tok_ref[:, n_streams:n_streams + 1], jnp.float32)   # (tm, 1)
    y = y + b_sum + uval * w_unc

    # LayerNorm over the embedding dim; cross-lane reductions go to the XLU.
    mean = jnp.mean(y, axis=-1, keepdims=True)
    c = y - mean
    var = jnp.mean(c * c, axis=-1, keepdims=True)
    o_ref[...] = (c * jax.lax.rsqrt(var + eps) * gamma + beta).astype(o_ref.dtype)


# -------------------------- index-level forward ----------------------------- #
def midi_embeddings_forward_from_tokens(tokens, uncond, params, config, *,
                                        valid=None, tm=1024):
    """Fast path.

    tokens: dict name -> (B, T) int token ids for the one-hot streams.
    uncond: (B, T) float values of the width-1 'unconditional' stream, or None.
    valid:  optional dict name -> (B, T) bool; False rows contribute bias only
            (matches a dense all-zero one-hot row).
    """
    E = int(config["embedding_size"])
    eps = float(config["layer_norm_eps"])
    names = [k for k in VOCAB_STREAMS if k in tokens]

    # Stacked weight table + per-stream column offsets, zero-padded to a lane
    # multiple with at least one guaranteed all-zero row (the "masked" target).
    w_list, offsets, col = [], [], 0
    for k in names:
        w = params[k]["weight"].astype(jnp.float32)          # (V_k, E)
        offsets.append(col)
        col += w.shape[0]
        w_list.append(w)
    vt = col
    vpad = _round_up(vt + 1, 128)
    zero_row = vt                                            # points at zero weights
    w_cat = (jnp.concatenate(w_list, axis=0) if w_list
             else jnp.zeros((0, E), jnp.float32))
    w_cat = jnp.pad(w_cat, ((0, vpad - vt), (0, 0)))

    b_sum = jnp.zeros((E,), jnp.float32)
    for k in names:
        b = params[k].get("bias")
        if b is not None:
            b_sum = b_sum + b.astype(jnp.float32)

    use_uncond = (uncond is not None) and (UNCOND in params)
    if use_uncond:
        w_unc = params[UNCOND]["weight"].astype(jnp.float32).reshape(1, E)
        bu = params[UNCOND].get("bias")
        if bu is not None:
            b_sum = b_sum + bu.astype(jnp.float32)
    else:
        w_unc = jnp.zeros((1, E), jnp.float32)

    ln_w = params["layer_norm"]["weight"].astype(jnp.float32).reshape(1, E)
    ln_b = params["layer_norm"].get("bias")
    ln_b = (jnp.zeros((1, E), jnp.float32) if ln_b is None
            else ln_b.astype(jnp.float32).reshape(1, E))

    # Single merged, VMEM-resident parameter operand: [W ; b_sum ; gamma ; beta ; w_unc ; 0].
    wp = jnp.concatenate(
        [w_cat, b_sum.reshape(1, E), ln_w, ln_b, w_unc,
         jnp.zeros((4, E), jnp.float32)], axis=0)            # (vpad + 8, E)

    ref_arr = tokens[names[0]] if names else uncond
    B, T = ref_arr.shape
    M = B * T

    # Per-row global indices; invalid (all-zero one-hot) rows -> zero weight row.
    gcols = []
    for k, off in zip(names, offsets):
        g = tokens[k].astype(jnp.int32) + off
        if valid is not None and k in valid:
            g = jnp.where(valid[k], g, zero_row)
        gcols.append(g)
    uvals = (uncond.astype(jnp.float32) if use_uncond
             else jnp.zeros((B, T), jnp.float32))

    if config["is_autoregressive"]:
        # torch.roll(x, 1, dim=1); x[:, 0] = 0 -- applied to the tiny index/value
        # arrays only; t==0 rows are remapped to the zero weight row so the kernel
        # needs no mask multiply (Linear(0) == bias still holds via b_sum).
        gcols = [jnp.roll(g, 1, axis=1).at[:, 0].set(zero_row) for g in gcols]
        uvals = jnp.roll(uvals, 1, axis=1).at[:, 0].set(0.0)

    ns = len(gcols)
    cols = [g.reshape(M, 1) for g in gcols]
    cols.append(jax.lax.bitcast_convert_type(uvals.reshape(M, 1), jnp.int32))
    if ns + 1 < _NC:
        cols.append(jnp.full((M, _NC - ns - 1), zero_row, jnp.int32))
    tok = jnp.concatenate(cols, axis=1)                      # (M, 8) int32, one DMA stream

    # Step count first, then tile: guarantees >= 2 grid steps (both v7x TCs busy)
    # and keeps padding below one tile even for awkward M.
    tm_cap = max(8, _round_up(int(tm), 8))
    n_steps = max(2, _cdiv(M, tm_cap))
    tm_eff = _round_up(_cdiv(M, n_steps), 8)
    grid_m = max(2, _cdiv(M, tm_eff))
    m_pad = grid_m * tm_eff
    if m_pad != M:
        # Padded rows point at the zero weight row; they are sliced off below.
        tok = jnp.pad(tok, ((0, m_pad - M), (0, 0)), constant_values=zero_row)

    kernel = functools.partial(_midi_embed_kernel, eps=eps, n_streams=ns, vpad=vpad)
    out = pl.pallas_call(
        kernel,
        out_shape=jax.ShapeDtypeStruct((m_pad, E), jnp.float32),
        grid_spec=pltpu.PrefetchScalarGridSpec(
            num_scalar_prefetch=0,
            grid=(grid_m,),
            in_specs=[
                pl.BlockSpec((tm_eff, _NC), lambda i: (i, 0)),
                pl.BlockSpec((vpad + 8, E), lambda i: (0, 0)),   # resident weights/params
            ],
            out_specs=pl.BlockSpec((tm_eff, E), lambda i: (i, 0)),
        ),
        compiler_params=pltpu.CompilerParams(dimension_semantics=("parallel",)),
    )(tok, wp)

    if m_pad != M:
        out = out[:M]
    # TODO(synk): dropout (hidden_dropout_prob) omitted -- identity in eval mode.
    return out.reshape(B, T, E)


# -------------------------- module-faithful forward -------------------------- #
def midi_embeddings_forward(input_streams, params, config, *, tm=1024):
    """Same interface as MIDIEmbeddings.forward: dict of dense (B, T, V_k) streams.

    Vocab streams are reduced once to int32 token ids; all-zero rows (e.g. padding)
    are detected and routed to the zero weight row so they contribute bias only,
    exactly like Linear(0).  The unconditional stream's raw value passes through.
    """
    tokens, valid = {}, {}
    for k in VOCAB_STREAMS:
        if k in input_streams:
            v = input_streams[k]
            tokens[k] = jnp.argmax(v, axis=-1).astype(jnp.int32)
            valid[k] = jnp.max(v, axis=-1) > 0
    uncond = input_streams[UNCOND][..., 0] if UNCOND in input_streams else None
    return midi_embeddings_forward_from_tokens(
        tokens, uncond, params, config, valid=valid, tm=tm)


# ----------------------------- reference (plain JAX) ------------------------- #
def midi_embeddings_reference(input_streams, params, config):
    if config["is_autoregressive"]:
        input_streams = {k: jnp.roll(v, 1, axis=1).at[:, 0].set(0.0)
                         for k, v in input_streams.items()}
    acc = 0.0
    for k in VOCAB_STREAMS + (UNCOND,):
        if k not in input_streams:
            continue
        y = input_streams[k].astype(jnp.float32) @ params[k]["weight"].astype(jnp.float32)
        b = params[k].get("bias")
        if b is not None:
            y = y + b
        acc = acc + y
    mean = jnp.mean(acc, axis=-1, keepdims=True)
    var = jnp.mean((acc - mean) ** 2, axis=-1, keepdims=True)
    out = (acc - mean) * jax.lax.rsqrt(var + config["layer_norm_eps"])
    return out * params["layer_norm"]["weight"] + params["layer_norm"]["bias"]


# ----------------------------------- main ------------------------------------ #
if __name__ == "__main__":
    config = dict(
        in_onset_vocab_size=16,
        in_duration_vocab_size=16,
        in_pitch_vocab_size=32,
        in_velocity_vocab_size=8,
        embedding_size=32,
        bias=True,
        layer_norm_eps=1e-12,
        hidden_dropout_prob=0.1,
        is_autoregressive=True,
    )
    vocab = dict(
        onset=config["in_onset_vocab_size"],
        duration=config["in_duration_vocab_size"],
        pitch=config["in_pitch_vocab_size"],
        velocity=config["in_velocity_vocab_size"],
        unconditional=1,
    )
    E = config["embedding_size"]

    key = jax.random.PRNGKey(0)

    # Deterministic synthetic parameters (torch nn.Linear weight stored pre-transposed as (V, E)).
    params = {}
    for name, V in vocab.items():
        key, kw, kb = jax.random.split(key, 3)
        bound = 1.0 / float(np.sqrt(V))
        params[name] = {
            "weight": jax.random.uniform(kw, (V, E), jnp.float32, -bound, bound),
            "bias": (
                jax.random.uniform(kb, (E,), jnp.float32, -bound, bound)
                if (config["bias"] and name != UNCOND)
                else None
            ),
        }
    key, kg, kbeta = jax.random.split(key, 3)
    params["layer_norm"] = {
        "weight": 1.0 + 0.05 * jax.random.normal(kg, (E,), jnp.float32),
        "bias": 0.05 * jax.random.normal(kbeta, (E,), jnp.float32),
    }

    def make_inputs(key, B, T):
        streams, toks = {}, {}
        for name, V in vocab.items():
            key, ki = jax.random.split(key)
            if name == UNCOND:
                streams[name] = jax.random.uniform(ki, (B, T, 1), jnp.float32)
            else:
                idx = jax.random.randint(ki, (B, T), 0, V)
                toks[name] = idx.astype(jnp.int32)
                streams[name] = jax.nn.one_hot(idx, V, dtype=jnp.float32)
        return key, streams, toks

    # Case 1: small (B=2, T=8), autoregressive; includes an all-zero one-hot row
    # to exercise the "bias-only" guard.  min-2-steps tiling -> two 8-row tiles.
    B, T = 2, 8
    key, streams, toks = make_inputs(key, B, T)
    streams_z = dict(streams)
    streams_z["onset"] = streams["onset"].at[0, 3].set(0.0)
    out = jax.block_until_ready(midi_embeddings_forward(streams_z, params, config))
    ref = midi_embeddings_reference(streams_z, params, config)
    np.testing.assert_allclose(np.asarray(out), np.asarray(ref), atol=2e-4, rtol=2e-4)

    # Case 2: token-id fast path (skips the dense one-hots entirely).
    out_tok = jax.block_until_ready(midi_embeddings_forward_from_tokens(
        toks, streams[UNCOND][..., 0], params, config))
    ref_tok = midi_embeddings_reference(streams, params, config)
    np.testing.assert_allclose(np.asarray(out_tok), np.asarray(ref_tok), atol=2e-4, rtol=2e-4)

    # Case 3: non-autoregressive branch.
    config_na = dict(config, is_autoregressive=False)
    out_na = jax.block_until_ready(midi_embeddings_forward(streams, params, config_na))
    ref_na = midi_embeddings_reference(streams, params, config_na)
    np.testing.assert_allclose(np.asarray(out_na), np.asarray(ref_na), atol=2e-4, rtol=2e-4)

    # Case 4: larger (B=2, T=300 -> M=600): two 304-row tiles + 8 padded rows,
    # exercising step-count-first tiling, row padding and resident-weight reuse.
    key, streams_l, _ = make_inputs(key, 2, 300)
    out_l = jax.block_until_ready(midi_embeddings_forward(streams_l, params, config))
    ref_l = midi_embeddings_reference(streams_l, params, config)
    np.testing.assert_allclose(np.asarray(out_l), np.asarray(ref_l), atol=2e-4, rtol=2e-4)

    print("KERNEL_OK")
</pallas_src>

<mosaic_0001>
module attributes {stable_mosaic.version = 11 : i64} {
  func.func @_midi_embed_kernel(%arg0: i32, %arg1: memref<8x8xi32, #tpu.memory_space<vmem>>, %arg2: memref<136x32xf32, #tpu.memory_space<vmem>>, %arg3: memref<8x32xf32, #tpu.memory_space<vmem>>) attributes {dimension_semantics = [#tpu.dimension_semantics<parallel>], iteration_bounds = array<i64: 2>, scalar_prefetch = 0 : i64, scratch_operands = 0 : i64, tpu.core_type = #tpu.core_type<tc>, window_params = [{transform_indices = @transform_0, window_bounds = array<i64: 8, 8>}, {pipeline_mode = #tpu.pipeline_mode<synchronous>, transform_indices = @transform_1, window_bounds = array<i64: 136, 32>}, {transform_indices = @transform_2, window_bounds = array<i64: 8, 32>}]} {
    %0 = tpu.iota {dimensions = array<i32: 1>} : vector<8x128xi32>
    %c0 = arith.constant 0 : index
    %c0_0 = arith.constant 0 : index
    %1 = vector.load %arg1[%c0, %c0_0] : memref<8x8xi32, #tpu.memory_space<vmem>>, vector<8x1xi32>
    %2 = vector.broadcast %1 : vector<8x1xi32> to vector<8x128xi32>
    %3 = arith.cmpi eq, %0, %2 : vector<8x128xi32>
    %c0_1 = arith.constant 0 : index
    %c1 = arith.constant 1 : index
    %4 = vector.load %arg1[%c0_1, %c1] : memref<8x8xi32, #tpu.memory_space<vmem>>, vector<8x1xi32>
    %5 = vector.broadcast %4 : vector<8x1xi32> to vector<8x128xi32>
    %6 = arith.cmpi eq, %0, %5 : vector<8x128xi32>
    %7 = arith.ori %3, %6 : vector<8x128xi1>
    %c0_2 = arith.constant 0 : index
    %c2 = arith.constant 2 : index
    %8 = vector.load %arg1[%c0_2, %c2] : memref<8x8xi32, #tpu.memory_space<vmem>>, vector<8x1xi32>
    %9 = vector.broadcast %8 : vector<8x1xi32> to vector<8x128xi32>
    %10 = arith.cmpi eq, %0, %9 : vector<8x128xi32>
    %11 = arith.ori %7, %10 : vector<8x128xi1>
    %c0_3 = arith.constant 0 : index
    %c3 = arith.constant 3 : index
    %12 = vector.load %arg1[%c0_3, %c3] : memref<8x8xi32, #tpu.memory_space<vmem>>, vector<8x1xi32>
    %13 = vector.broadcast %12 : vector<8x1xi32> to vector<8x128xi32>
    %14 = arith.cmpi eq, %0, %13 : vector<8x128xi32>
    %15 = arith.ori %11, %14 : vector<8x128xi1>
    %16 = arith.extui %15 : vector<8x128xi1> to vector<8x128xi32>
    %17 = arith.sitofp %16 : vector<8x128xi32> to vector<8x128xf32>
    %c0_4 = arith.constant 0 : index
    %c0_5 = arith.constant 0 : index
    %18 = vector.load %arg2[%c0_4, %c0_5] : memref<136x32xf32, #tpu.memory_space<vmem>>, vector<128x32xf32>
    %cst = arith.constant dense<0.000000e+00> : vector<8x32xf32>
    %19 = tpu.matmul %17, %18, %cst {dimension_numbers = #tpu.dot_dimension_numbers<[1], [0], [0], [1], [0, 0, 1, 1], [], []>} : vector<8x128xf32>, vector<128x32xf32>, vector<8x32xf32> -> vector<8x32xf32>
    %c128 = arith.constant 128 : index
    %c0_6 = arith.constant 0 : index
    %20 = vector.load %arg2[%c128, %c0_6] : memref<136x32xf32, #tpu.memory_space<vmem>>, vector<1x32xf32>
    %c129 = arith.constant 129 : index
    %c0_7 = arith.constant 0 : index
    %21 = vector.load %arg2[%c129, %c0_7] : memref<136x32xf32, #tpu.memory_space<vmem>>, vector<1x32xf32>
    %c130 = arith.constant 130 : index
    %c0_8 = arith.constant 0 : index
    %22 = vector.load %arg2[%c130, %c0_8] : memref<136x32xf32, #tpu.memory_space<vmem>>, vector<1x32xf32>
    %c131 = arith.constant 131 : index
    %c0_9 = arith.constant 0 : index
    %23 = vector.load %arg2[%c131, %c0_9] : memref<136x32xf32, #tpu.memory_space<vmem>>, vector<1x32xf32>
    %c0_10 = arith.constant 0 : index
    %c4 = arith.constant 4 : index
    %24 = vector.load %arg1[%c0_10, %c4] : memref<8x8xi32, #tpu.memory_space<vmem>>, vector<8x1xi32>
    %25 = tpu.bitcast %24 : vector<8x1xi32> -> vector<8x1xf32>
    %26 = vector.broadcast %20 : vector<1x32xf32> to vector<8x32xf32>
    %27 = arith.addf %19, %26 : vector<8x32xf32>
    %28 = vector.broadcast %25 : vector<8x1xf32> to vector<8x32xf32>
    %29 = vector.broadcast %23 : vector<1x32xf32> to vector<8x32xf32>
    %30 = arith.mulf %28, %29 : vector<8x32xf32>
    %31 = arith.addf %27, %30 : vector<8x32xf32>
    %cst_11 = arith.constant dense<0.000000e+00> : vector<8xf32>
    %32 = vector.multi_reduction <add>, %31, %cst_11 [1] : vector<8x32xf32> to vector<8xf32>
    %33 = vector.shape_cast %32 : vector<8xf32> to vector<8x1xf32>
    %cst_12 = arith.constant 3.200000e+01 : f32
    %34 = vector.broadcast %cst_12 : f32 to vector<8x1xf32>
    %35 = arith.divf %33, %34 : vector<8x1xf32>
    %36 = vector.broadcast %35 : vector<8x1xf32> to vector<8x32xf32>
    %37 = arith.subf %31, %36 : vector<8x32xf32>
    %38 = arith.mulf %37, %37 : vector<8x32xf32>
    %cst_13 = arith.constant dense<0.000000e+00> : vector<8xf32>
    %39 = vector.multi_reduction <add>, %38, %cst_13 [1] : vector<8x32xf32> to vector<8xf32>
    %40 = vector.shape_cast %39 : vector<8xf32> to vector<8x1xf32>
    %cst_14 = arith.constant 3.200000e+01 : f32
    %41 = vector.broadcast %cst_14 : f32 to vector<8x1xf32>
    %42 = arith.divf %40, %41 : vector<8x1xf32>
    %cst_15 = arith.constant 9.99999996E-13 : f32
    %43 = vector.broadcast %cst_15 : f32 to vector<8x1xf32>
    %44 = arith.addf %42, %43 : vector<8x1xf32>
    %45 = math.rsqrt %44 : vector<8x1xf32>
    %46 = vector.broadcast %45 : vector<8x1xf32> to vector<8x32xf32>
    %47 = arith.mulf %37, %46 : vector<8x32xf32>
    %48 = vector.broadcast %21 : vector<1x32xf32> to vector<8x32xf32>
    %49 = arith.mulf %47, %48 : vector<8x32xf32>
    %50 = vector.broadcast %22 : vector<1x32xf32> to vector<8x32xf32>
    %51 = arith.addf %49, %50 : vector<8x32xf32>
    %c0_16 = arith.constant 0 : index
    %c0_17 = arith.constant 0 : index
    %52 = vector.load %arg3[%c0_16, %c0_17] : memref<8x32xf32, #tpu.memory_space<vmem>>, vector<8x32xf32>
    tpu.vector_store %arg3[%c0_16, %c0_17], %51 {strides = array<i32>} : memref<8x32xf32, #tpu.memory_space<vmem>>, vector<8x32xf32>,
    return
  }
  func.func @transform_0(%arg0: i32) -> (i32, i32) {
    %c0_i32 = arith.constant 0 : i32
    %c0_i32_0 = arith.constant 0 : i32
    return %arg0, %c0_i32 : i32, i32
  }
  func.func @transform_1(%arg0: i32) -> (i32, i32) {
    %c0_i32 = arith.constant 0 : i32
    %c0_i32_0 = arith.constant 0 : i32
    %c0_i32_1 = arith.constant 0 : i32
    return %c0_i32, %c0_i32_0 : i32, i32
  }
  func.func @transform_2(%arg0: i32) -> (i32, i32) {
    %c0_i32 = arith.constant 0 : i32
    %c0_i32_0 = arith.constant 0 : i32
    return %arg0, %c0_i32 : i32, i32
  }
}

</mosaic_0001>

<bundles_post_ra>
// kernel: tpu_custom_call.1
= control target key start
LH: loop header
LB: loop body
LE: loop exit
PB: predicated region body
PF: predicated region fallthrough
CT: control target
= control target key end

     0   :  { %7 = vsyncpa [#allocation3], 0  ;;  %s766_s0 = inlined_call_operand.vmem [shape: s32[16,8], index: 0, kind: input, shape index: {}]   ;;  %s767_s1 = inlined_call_operand.vmem [shape: f32[136,32], index: 1, kind: input, shape index: {}]   ;;  %s768_s2 = inlined_call_operand.hbm [shape: f32[16,32], index: 2, kind: output, shape index: {}]  }
   0x1   :  { %9 = vsyncpa [#allocation3 + $0x1], 0  ;;  %s603_s9 = smov 0   ;;  %s605_s10 = smov 0  }
   0x2   :  { %s607_s11 = smov 0   ;;  %s609_s12 = smov 0  }
   0x3 LB: > { %s624_s13 = sadd.s32 4294967295, %s576_s12   ;;  %s366_s14 = sadd.s32 4294967294, %s576_s12   ;;  %s576_s12 = sphi %s609_s12, %s774_s12   ;;  %s572_s11 = sphi %s607_s11, %s773_s11   ;;  %s568_s10 = sphi %s605_s10, %s772_s10   ;;  %s564_s9 = sphi %s603_s9, %s771_s9  }
   0x4   : > { %s628_s15 = sadd.s32 1, %s576_s12   ;;  %s69_s16 = sadd.s32 1, %s572_s11 }
   0x5   : > { %s66_s17 = ssub.s32 %s576_s12, %s628_s15  ;;  %p79_p0 = scmp.ne.s32.totalorder %s572_s11, %s568_s10 }
   0x6   : > { %p67_p1 = scmp.eq.s32.totalorder %s66_s17, 0  ;;  %p80_p2 = scmp.eq.s32.totalorder %s624_s13, 1 }
   0x7   : > { %p85_p3 = scmp.ne.s32.totalorder %s568_s10, %s564_s9  ;;  %p86_p4 = scmp.eq.s32.totalorder %s366_s14, 1 }
   0x8   : > { %s639_s18 = scalar_select %p67_p1, %s572_s11, %s69_s16  }
   0x9   : > { %p641_p5 = por %p80_p2, %p79_p0  ;;  %p645_p6 = por %p86_p4, %p85_p3 }
   0xa   : > { %p369_p7 = scmp.ge.s32.totalorder %s576_s12, 1  ;;  %p114_p8 = scmp.lt.s32.totalorder %s576_s12, 3 }
   0xc   : > { %p115_p9 = pnand %p369_p7, %p114_p8 }
   0xd   : > { %p135_p10 = scmp.lt.s32.totalorder (!%p115_p9), %s624_s13, 1  ;;  %v163_v0 = vld [vmem:[%s767_s1] sm:$0xff] (!%p115_p9)  ;;  %v578_v1 = vmov (!%p115_p9), 0   ;;  %v579_v2 = vmov (!%p115_p9), 2   ;;  %v164_v3 = vld [vmem:[%s767_s1 + $0x8] sm:$0xff] (!%p115_p9)  ;;  %v165_v4 = vld [vmem:[%s767_s1 + $0x10] sm:$0xff] (!%p115_p9)  ;;  %v139_v32 = vlaneseq (!%p115_p9) }
   0xe   : > { %118 = sbr.rel (%p115_p9) target bundleno = 706 (0x2c2), region = 28  ;;  %506 = vset.pattern.permute.xlu0 (!%p115_p9), %v578_v1  ;;  %508 = vset.pattern.permute.xlu1 (!%p115_p9), %v579_v2  ;;  %v166_v5 = vld [vmem:[%s767_s1 + $0x18] sm:$0xff] (!%p115_p9)  ;;  %v580_v6 = vmov (!%p115_p9), 0.0|0.0   ;;  %v435_v7 = vpack.c.bf16 (!%p115_p9), %v164_v3, %v163_v0  ;;  %v167_v10 = vld [vmem:[%s767_s1 + $0x20] sm:$0xff] (!%p115_p9)  ;;  %v168_v11 = vld [vmem:[%s767_s1 + $0x28] sm:$0xff] (!%p115_p9)  ;;  %v581_v15 = vmov (!%p115_p9), 1  }
   0xf   : > { %434 = vmatprep.subr.bf16.mxu0 (!%p115_p9), %v580_v6  ;;  %v438_v8 = vpack.c.bf16 (!%p115_p9), %v166_v5, %v165_v4  ;;  %v441_v12 = vpack.c.bf16 (!%p115_p9), %v168_v11, %v167_v10  ;;  %v169_v13 = vld [vmem:[%s767_s1 + $0x30] sm:$0xff] (!%p115_p9)  ;;  %v170_v14 = vld [vmem:[%s767_s1 + $0x38] sm:$0xff] (!%p115_p9)  ;;  %v582_v16 = vmov (!%p115_p9), 3   ;;  %v171_v18 = vld [vmem:[%s767_s1 + $0x40] sm:$0xff] (!%p115_p9)  ;;  %vm583_vm0 = vmmov (!%p115_p9), 0   ;;  %s132_s24 = sand.u32 (!%p115_p9), 1, %s568_s10  }
  0x10   : > { %436 = vmatpush3.bf16.msra.mxu0 (!%p115_p9), %v435_v7  ;;  %v444_v17 = vpack.c.bf16 (!%p115_p9), %v170_v14, %v169_v13  ;;  %v172_v19 = vld [vmem:[%s767_s1 + $0x48] sm:$0xff] (!%p115_p9)  ;;  %v584_v20 = vmov (!%p115_p9), 0.0   ;;  %v585_v22 = vmov (!%p115_p9), 4   ;;  %v173_v23 = vld [vmem:[%s767_s1 + $0x50] sm:$0xff] (!%p115_p9)  ;;  %v174_v24 = vld [vmem:[%s767_s1 + $0x58] sm:$0xff] (!%p115_p9)  ;;  %v140_v35 = vand.u32 (!%p115_p9), 127, %v139_v32 }
  0x11   : > { %437 = vmatprep.subr.bf16.mxu0 (!%p115_p9), %v580_v6  ;;  %431 = vmatprep.mubr.msk.f32.mxu0 (!%p115_p9), %vm583_vm0, %v584_v20  ;;  %v447_v21 = vpack.c.bf16 (!%p115_p9), %v172_v19, %v171_v18  ;;  %v450_v25 = vpack.c.bf16 (!%p115_p9), %v174_v24, %v173_v23  ;;  %v175_v26 = vld [vmem:[%s767_s1 + $0x60] sm:$0xff] (!%p115_p9)  ;;  %v176_v27 = vld [vmem:[%s767_s1 + $0x68] sm:$0xff] (!%p115_p9)  ;;  %v177_v29 = vld [vmem:[%s767_s1 + $0x70] sm:$0xff] (!%p115_p9)  ;;  %v586_v38 = vmov (!%p115_p9), 1.0   ;;  %vm267_vm8 = vcmask (!%p115_p9), 261120   ;;  %s370_s25 = sshll.u32 (!%p115_p9), %s132_s24, 3 }
  0x12   : > { %v453_v28 = vpack.c.bf16 (!%p115_p9), %v176_v27, %v175_v26  ;;  %v178_v30 = vld [vmem:[%s767_s1 + $0x78] sm:$0xff] (!%p115_p9)  ;;  %v375_v39 = vld [vmem:[%s767_s1 + $0x83] ss:$0 sm:$0xff] (!%p115_p9)  ;;  %v373_v41 = vld [vmem:[%s767_s1 + $0x80] ss:$0 sm:$0xff] (!%p115_p9)  ;;  %s134_s3 = scalar_lea.vmem (!%p115_p9), [#allocation2], %s370_s25 }
  0x13   : > { %v456_v31 = vpack.c.bf16 (!%p115_p9), %v178_v30, %v177_v29  ;;  %v376_v57 = vld [vmem:[%s767_s1 + $0x81] ss:$0 sm:$0xff] (!%p115_p9)  ;;  %v377_v59 = vld [vmem:[%s767_s1 + $0x82] ss:$0 sm:$0xff] (!%p115_p9)  ;;  %s307_s4 = sshll.u32 (!%p115_p9), %s134_s3, 4  ;;  %s294_s8 = scalar_lea.sflag (!%p115_p9), [#allocation3], %s132_s24  ;;  %s725_s4 = int_to_ptr.vmem [resolvable:$true] %s307_s4 }
  0x14   : > { %439 = vmatpush3.bf16.msra.mxu0 (!%p115_p9), %v438_v8  ;;  %s514_s14 = scalar_lea.vmem (!%p115_p9), %s725_s4, 128 }
  0x15   : > { %s136_s29 = scalar_select %p135_p10, %s624_s13, 1  ;;  %440 = vmatprep.subr.bf16.mxu0 %v580_v6 }
  0x16   : > { %p515_p11 = scmp.ne.s32.totalorder %s725_s4, %s514_s14 }
  0x17   : > { %s371_s30 = sshll.u32 %s136_s29, 3 }
  0x18   : > { %s138_s5 = scalar_lea.vmem %s766_s0, %s371_s30  ;;  %442 = vmatpush3.bf16.msra.mxu0 %v441_v12  ;;  %s379_s30 = sshll.u32 %s624_s13, 7 }
  0x19   : > { %v141_v9 = vld [vmem:[%s138_s5] sm:$0xff]  ;;  %443 = vmatprep.subr.bf16.mxu0 %v580_v6  ;;  %s723_s7 = scalar_lea.hbm %s768_s2, %s379_s30  ;;  %p516_p12 = pnand %p515_p11, %p641_p5 }
  0x1a   : > { %143 = vperm.xlu0 %506, %v141_v9   ;;  %152 = vperm.xlu1 %508, %v141_v9   ;;  %s587_s13 = smov [#allocation2]  }
  0x1b   : > { %p517_p13 = pneg %p516_p12  ;;  %s518_s16 = sshll.u32 %s587_s13, 4  ;;  %s519_s16 = int_to_ptr.vmem [resolvable:$false] %s518_s16 }
  0x1c   : > { %445 = vmatpush3.bf16.msra.mxu0 %v444_v17  ;;  %s520_s17 = scalar_lea.vmem %s519_s16, 256  ;;  %p521_p0 = scmp.lt.s32.totalorder %s725_s4, %s519_s16 }
  0x1d   : > { %446 = vmatprep.subr.bf16.mxu0 %v580_v6  ;;  %p522_p1 = scmp.lt.s32.totalorder %s520_s17, %s514_s14 }
  0x1e   : > { %507 = vset.pattern.permute.xlu0 %v581_v15  ;;  %509 = vset.pattern.permute.xlu1 %v582_v16 }
  0x1f   : > { %147 = vperm.xlu0 %507, %v141_v9   ;;  %157 = vperm.xlu1 %509, %v141_v9   ;;  %p523_p2 = por %p522_p1, %p521_p0 }
  0x20   : > { %448 = vmatpush3.bf16.msra.mxu0 %v447_v21 }
  0x21   : > { %449 = vmatprep.subr.bf16.mxu0 %v580_v6  ;;  %p524_p3 = pnand %p523_p2, %p517_p13 }
  0x23   : > { %510 = vset.pattern.permute.xlu1 %v585_v22  ;;  %511 = vset.pattern.permute.xlu0 %v585_v22 }
  0x24   : > { %258 = vperm.xlu1 %510, %v141_v9   ;;  %451 = vmatpush3.bf16.msra.mxu0 %v450_v25 }
  0x25   : > { %452 = vmatprep.subr.bf16.mxu0 %v580_v6 }
  0x28   : > { %454 = vmatpush3.bf16.msra.mxu0 %v453_v28 }
  0x29   : > { %455 = vmatprep.subr.bf16.mxu0 %v580_v6 }
  0x2c   : > { %457 = vmatpush3.bf16.msra.mxu0 %v456_v31 }
  0x99   : > { %v144_v33 = vpop.permute.xlu0 %143  ;;  %v153_v34 = vpop.permute.xlu1 %152 }
  0x9a   : > { %vm145_vm1 = vcmp.eq.s32.totalorder %v140_v35, %v144_v33  ;;  %vm154_vm4 = vcmp.eq.s32.totalorder %v140_v35, %v153_v34 }
  0x9e   : > { %v148_v36 = vpop.permute.xlu0 %147  ;;  %v158_v37 = vpop.permute.xlu1 %157 }
  0x9f   : > { %vm149_vm2 = vcmp.eq.s32.totalorder %v140_v35, %v148_v36  ;;  %vm159_vm3 = vcmp.eq.s32.totalorder %v140_v35, %v158_v37 }
  0xa0   : > { %vm150_vm5 = vmor %vm145_vm1, %vm149_vm2 }
  0xa1   : > { %vm155_vm6 = vmor %vm150_vm5, %vm154_vm4 }
  0xa2   : > { %vm160_vm7 = vmor %vm155_vm6, %vm159_vm3 }
  0xa3   : > { %432 = vmatmul.mubr.msk.f32.vlgmr.msra.gmra.mrb[0].mxu0 %vm160_vm7, %v586_v38  ;;  %v259_v40 = vpop.permute.xlu1 %258 }
  0xa4   : > { %v265_v42 = vmul.f32 %v375_v39, %v259_v40 }
 0x176   : > { %v253_v43 = vpop.f32.mrb[0].mxu0 }
 0x177   : > { %v254_v44 = vadd.f32 %v373_v41, %v253_v43  ;;  %v433_v45 = vpop.f32.mrb[1].mxu0 }
 0x179   : > { %v266_v46 = vadd.f32 %v265_v42, %v254_v44 }
 0x17b   : > { %v268_v47 = vsel %vm267_vm8, %v266_v46, 0.0 }
 0x17c   : > { %269 = vadd.xlane.f32.xlu0 %v268_v47 }
 0x209   : > { %v270_v48 = vpop.xlane.xlu0 %269 }
 0x20a   : > { %v272_v49 = vmul.f32 0.03125, %v270_v48 }
 0x20c   : > { %v273_v50 = vsub.f32 %v266_v46, %v272_v49 }
 0x20e   : > { %v274_v51 = vmul.f32 %v273_v50, %v273_v50 }
 0x210   : > { %v275_v52 = vsel %vm267_vm8, %v274_v51, 0.0 }
 0x211   : > { %276 = vadd.xlane.f32.xlu1 %v275_v52 }
 0x29e   : > { %v277_v53 = vpop.xlane.xlu1 %276 }
 0x29f   : > { %v278_v54 = vmul.f32 0.03125, %v277_v53 }
 0x2a1   : > { %v279_v55 = vadd.f32 1e-12, %v278_v54 }
 0x2a3   : > { %512 = vrsqrt.f32 %v279_v55 }
 0x2ad   : > { %v513_v56 = vpop.eup %512 }
 0x2ae   : > { %v281_v58 = vmul.f32 %v513_v56, %v273_v50 }
 0x2b0   : > { %v286_v60 = vmul.f32 %v376_v57, %v281_v58 }
 0x2b2   : > { %v291_v61 = vadd.f32 %v377_v59, %v286_v60 }
 0x2b4   : > { %292 = vst.msk [vmem:[%s134_s3] sm:$0xff] %vm267_vm8, %v291_v61 }
 0x2b5   : > { %527 = shalt.err (!%p524_p3)
}
 0x2b6   : > { %s528_s21 = scalar_lea.hbm %s723_s7, 128  ;;  %s532_s24 = scalar_lea.hbm %s768_s2, 256 }
 0x2b7   : > { %p529_p4 = scmp.ne.s32.totalorder %s723_s7, %s528_s21  ;;  %p533_p9 = scmp.lt.u32.totalorder %s723_s7, %s768_s2 }
 0x2b8   : > { %p534_p10 = scmp.lt.u32.totalorder %s532_s24, %s528_s21  ;;  %p536_p12 = scmp.lt.u32.totalorder %s528_s21, %s723_s7 }
 0x2b9   : > { %p530_p7 = pnand %p529_p4, %p641_p5 }
 0x2ba   : > { %p535_p11 = por %p534_p10, %p533_p9 }
 0x2bb   : > { %p531_p8 = pneg %p530_p7 }
 0x2bc   : > { %p537_p13 = por %p536_p12, %p535_p11 }
 0x2be   : > { %p538_p0 = pnand %p537_p13, %p531_p8 }
 0x2c0   : > { %541 = shalt.err (!%p538_p0)
}
 0x2c1   : > { %458 = dma.vmem_to_hbm [thread:$0]  (%p641_p5), %s725_s4, 128, %s723_s7, %s294_s8  }
 0x2c2 PF: > { %p464_p1 = scmp.ge.s32.totalorder %s576_s12, 2  ;;  %s319_s27 = sand.u32 1, %s564_s9  }
 0x2c3   : > { %s320_s28 = scalar_lea.sflag [#allocation3], %s319_s27 }
 0x2c4   : > { %p461_p2 = pnand %p464_p1, %p645_p6 }
 0x2c6   : > { %559 = dma.done.wait (!%p461_p2), %s320_s28, 128  }
 0x2c7   : > { %561 = vsyncadd (!%p461_p2), %s320_s28, 4294967168  ;;  %p12_p3 = scmp.ge.s32.totalorder %s628_s15, 4   ;;  %s771_s9 = smov %s568_s10 }
 0x2c8   : > { %s772_s10 = smov %s572_s11  ;;  %s773_s11 = smov %s639_s18 }
 0x2c9   : > { %s774_s12 = smov %s628_s15  ;;  %14 = sbr.rel (!%p12_p3) target bundleno = 3 (0x3), region = 63 }
 0x2d0   :  { %325 = vsyncpa [#allocation3], 1 }
 0x2d1   :  { %327 = vsyncpa [#allocation3 + $0x1], 1 }

</bundles_post_ra>
